<compile_context>
chip_gen: v7x
topology: tpu7x:2x2x1
jax: 0.10.0
libtpu: 0.0.40
codegen_flags: <defaults>
</compile_context>

<pallas_src>
import functools

import jax
import jax.numpy as jnp
from jax.experimental import pallas as pl
from jax.experimental.pallas import tpu as pltpu

LN_EPS = 1e-5


def _vmem_limit_bytes():
    try:
        cap = int(pltpu.get_tpu_info().vmem_capacity_bytes)
    except Exception:
        cap = 128 * 1024 * 1024
    # ~62% of physical VMEM, capped at 96 MiB (v5e/v6e -> 80 MiB, v7x -> 40 MiB).
    return int(min(96 * 1024 * 1024, cap * 5 // 8))


def _layernorm(x, gamma, beta):
    mu = jnp.mean(x, axis=-1, keepdims=True)
    var = jnp.mean((x - mu) ** 2, axis=-1, keepdims=True)
    return (x - mu) * jax.lax.rsqrt(var + LN_EPS) * gamma + beta


def _token_tile(n, cap=512):
    """Largest 8-aligned divisor of n that is <= cap (falls back to n itself)."""
    best = None
    t = 8
    while t <= min(n, cap):
        if n % t == 0:
            best = t
        t += 8
    return best if best is not None else n


def _head_group(num_heads, hd):
    """Heads per grid step: aim for a lane-dense (>=128-wide) output block."""
    g = max(1, min(num_heads, 128 // max(hd, 1)))
    while num_heads % g:
        g -= 1
    if (g * hd) % 128 != 0 and g != num_heads:
        g = num_heads  # fall back to a full-C output block (always legal)
    return g


# --------------------------------------------------------------------------- #
# Kernel 1: per-(batch, head-group) attention                                  #
#   LN1 (cached) + fused group QKV matmul + softmax + P@V, lane-dense output.  #
# --------------------------------------------------------------------------- #
def attn_kernel(x_ref, g1_ref, be1_ref, w_ref, o_ref, xn_sc, *, g, hd):
    # LN1 computed once per batch row; head-group axis is "arbitrary" and
    # iterates fastest, so the cached value is valid for all later groups.
    @pl.when(pl.program_id(1) == 0)
    def _():
        x = x_ref[0].astype(jnp.float32)                            # (N, C)
        xn_sc[...] = _layernorm(x, g1_ref[0], be1_ref[0]).astype(jnp.bfloat16)

    xn = xn_sc[...]                                                 # (N, C) bf16
    # One fused QKV matmul for the whole head group (3*g*hd output columns).
    qkv = jnp.dot(xn, w_ref[0], preferred_element_type=jnp.float32)  # (N, 3*g*hd)

    gw = g * hd
    ys = []
    for h in range(g):                                              # static unroll
        q = qkv[:, h * hd:(h + 1) * hd].astype(jnp.bfloat16)        # scale pre-folded
        k = qkv[:, gw + h * hd:gw + (h + 1) * hd].astype(jnp.bfloat16)
        v = qkv[:, 2 * gw + h * hd:2 * gw + (h + 1) * hd].astype(jnp.bfloat16)

        # q @ k.T without an explicit transpose.
        s = jax.lax.dot_general(q, k, (((1,), (1,)), ((), ())),
                                preferred_element_type=jnp.float32)  # (N, N)
        s = s - jnp.max(s, axis=-1, keepdims=True)
        p = jnp.exp(s)
        denom = jnp.sum(p, axis=-1, keepdims=True)
        y = jnp.dot(p.astype(jnp.bfloat16), v,
                    preferred_element_type=jnp.float32)              # (N, hd)
        # Deferred softmax normalization: O(N*hd) multiply instead of O(N^2).
        ys.append(y * pl.reciprocal(denom, approx=True))

    out = ys[0] if g == 1 else jnp.concatenate(ys, axis=-1)          # (N, g*hd)
    o_ref[0] = out.astype(o_ref.dtype)


# --------------------------------------------------------------------------- #
# Kernel 2: output proj + residual + LN2 + GELU MLP + residual                 #
# --------------------------------------------------------------------------- #
def mlp_kernel(x_ref, y_ref, wp_ref, bp_ref, g2_ref, be2_ref,
               w1_ref, b1_ref, w2_ref, b2_ref, o_ref):
    x = x_ref[0].astype(jnp.float32)                                 # (tn, C)

    attn = jnp.dot(y_ref[0], wp_ref[...],
                   preferred_element_type=jnp.float32) + bp_ref[0]
    x1 = x + attn                                                    # residual 1

    xn2 = _layernorm(x1, g2_ref[0], be2_ref[0]).astype(jnp.bfloat16)
    h = jnp.dot(xn2, w1_ref[...], preferred_element_type=jnp.float32) + b1_ref[0]
    h = jax.nn.gelu(h, approximate=False)          # exact erf GELU (nn.GELU default)
    h = jnp.dot(h.astype(jnp.bfloat16), w2_ref[...],
                preferred_element_type=jnp.float32) + b2_ref[0]

    o_ref[0] = (x1 + h).astype(o_ref.dtype)                          # residual 2


# --------------------------------------------------------------------------- #
# One-time parameter preparation (layout + bf16 casts)                         #
# --------------------------------------------------------------------------- #
def prepare_block_params(params, *, num_heads):
    """Call ONCE; do not re-layout/re-cast weights on every forward pass."""
    C = params["wqkv"].shape[0]
    hd = C // num_heads
    scale = hd ** -0.5
    g = _head_group(num_heads, hd)
    n_groups = num_heads // g

    wqkv = params["wqkv"]                                      # (C, 3C), x @ W layout
    wq = wqkv[:, 0:C].reshape(C, num_heads, hd) * scale        # fold softmax scale
    wk = wqkv[:, C:2 * C].reshape(C, num_heads, hd)
    wv = wqkv[:, 2 * C:].reshape(C, num_heads, hd)

    def group(w):                                              # (C, H, hd) -> (G, C, g*hd)
        return (w.reshape(C, n_groups, g, hd)
                 .transpose(1, 0, 2, 3)
                 .reshape(n_groups, C, g * hd))

    wqkv_g = jnp.concatenate([group(wq), group(wk), group(wv)],
                             axis=-1).astype(jnp.bfloat16)     # (G, C, 3*g*hd)

    return {
        "num_heads": num_heads, "head_dim": hd, "heads_per_step": g,
        "g1": params["g1"], "be1": params["be1"],
        "wqkv_g": wqkv_g,
        "wproj": params["wproj"].astype(jnp.bfloat16), "bproj": params["bproj"],
        "g2": params["g2"], "be2": params["be2"],
        "w1": params["w1"].astype(jnp.bfloat16), "bm1": params["bm1"],
        "w2": params["w2"].astype(jnp.bfloat16), "bm2": params["bm2"],
    }


# --------------------------------------------------------------------------- #
# Wrapper                                                                      #
# --------------------------------------------------------------------------- #
def vit_block(x, prep):
    B, N, C = x.shape
    num_heads = prep["num_heads"]
    hd = prep["head_dim"]
    g = prep["heads_per_step"]
    n_groups = num_heads // g
    gw = g * hd
    Hm = prep["w1"].shape[1]
    vmem = _vmem_limit_bytes()

    # ---- attention kernel: grid (B, head_groups), lane-dense (B,N,C) output ----
    attn_cost = pl.CostEstimate(
        flops=int(B * (6 * N * C * C + 4 * N * N * C)),
        transcendentals=int(B * num_heads * N * N),
        bytes_accessed=int(B * N * C * 4 + 3 * C * C * 2 + B * N * C * 2))

    y = pl.pallas_call(
        functools.partial(attn_kernel, g=g, hd=hd),
        out_shape=jax.ShapeDtypeStruct((B, N, C), jnp.bfloat16),
        grid=(B, n_groups),
        in_specs=[
            pl.BlockSpec((1, N, C), lambda b, hg: (b, 0, 0)),        # x (one DMA per b)
            pl.BlockSpec((1, C), lambda b, hg: (0, 0)),              # norm1 gamma
            pl.BlockSpec((1, C), lambda b, hg: (0, 0)),              # norm1 beta
            pl.BlockSpec((1, C, 3 * gw), lambda b, hg: (hg, 0, 0)),  # fused group QKV W
        ],
        out_specs=pl.BlockSpec((1, N, gw), lambda b, hg: (b, 0, hg)),
        scratch_shapes=[pltpu.VMEM((N, C), jnp.bfloat16)],           # cached LN1(x)
        compiler_params=pltpu.CompilerParams(
            dimension_semantics=("parallel", "arbitrary"),
            vmem_limit_bytes=vmem),
        cost_estimate=attn_cost,
    )(x, prep["g1"], prep["be1"], prep["wqkv_g"])

    # ---- proj + residual + LN2 + MLP + residual: grid (B, token tiles) ----
    tn = _token_tile(N)

    mlp_cost = pl.CostEstimate(
        flops=int(B * N * (2 * C * C + 4 * C * Hm)),
        transcendentals=int(B * N * Hm),
        bytes_accessed=int(B * N * C * (4 + 2 + 4) + (C * C + 2 * C * Hm) * 2))

    args = (x, y, prep["wproj"], prep["bproj"], prep["g2"], prep["be2"],
            prep["w1"], prep["bm1"], prep["w2"], prep["bm2"])

    def run(single_buffer_weights):
        if single_buffer_weights:
            # Grid-invariant blocks: no point double-buffering them (saves VMEM,
            # matters on v7x's 64 MiB parts).
            const = lambda shape: pl.BlockSpec(
                shape, lambda b, t: (0,) * len(shape),
                pipeline_mode=pl.Buffered(1))
        else:
            const = lambda shape: pl.BlockSpec(shape, lambda b, t: (0,) * len(shape))
        tok = pl.BlockSpec((1, tn, C), lambda b, t: (b, t, 0))
        return pl.pallas_call(
            mlp_kernel,
            out_shape=jax.ShapeDtypeStruct((B, N, C), x.dtype),
            grid=(B, N // tn),
            in_specs=[
                tok,                                    # x (residual stream, f32)
                tok,                                    # attention output (bf16)
                const((C, C)), const((1, C)),           # proj weight / bias
                const((1, C)), const((1, C)),           # norm2 gamma / beta
                const((C, Hm)), const((1, Hm)),         # fc1 weight / bias
                const((Hm, C)), const((1, C)),          # fc2 weight / bias
            ],
            out_specs=pl.BlockSpec((1, tn, C), lambda b, t: (b, t, 0)),
            compiler_params=pltpu.CompilerParams(
                dimension_semantics=("parallel", "parallel"),
                vmem_limit_bytes=vmem),
            cost_estimate=mlp_cost,
        )(*args)

    try:
        return run(single_buffer_weights=True)
    except Exception:
        # TODO(synk): drop this fallback once pl.Buffered(1) support is confirmed
        # on every deployed toolchain; semantics are identical either way.
        return run(single_buffer_weights=False)


# --------------------------------------------------------------------------- #
# Pure-JAX f32 reference (mirrors the PyTorch forward) for verification        #
# --------------------------------------------------------------------------- #
def reference_block(x, params, *, num_heads):
    B, N, C = x.shape
    hd = C // num_heads
    scale = hd ** -0.5
    xf = x.astype(jnp.float32)

    def ln(v, g, b):
        mu = jnp.mean(v, axis=-1, keepdims=True)
        var = jnp.mean((v - mu) ** 2, axis=-1, keepdims=True)
        return (v - mu) / jnp.sqrt(var + LN_EPS) * g + b

    xn = ln(xf, params["g1"][0], params["be1"][0])
    qkv = xn @ params["wqkv"]                                        # (B, N, 3C)
    qkv = qkv.reshape(B, N, 3, num_heads, hd).transpose(2, 0, 3, 1, 4)
    q, k, v = qkv[0], qkv[1], qkv[2]                                 # (B, h, N, hd)
    attn = jnp.einsum("bhnd,bhmd->bhnm", q, k) * scale
    attn = jax.nn.softmax(attn, axis=-1)
    y = jnp.einsum("bhnm,bhmd->bhnd", attn, v)
    y = y.transpose(0, 2, 1, 3).reshape(B, N, C)
    y = y @ params["wproj"] + params["bproj"][0]
    xf = xf + y

    xn2 = ln(xf, params["g2"][0], params["be2"][0])
    h = jax.nn.gelu(xn2 @ params["w1"] + params["bm1"][0], approximate=False)
    h = h @ params["w2"] + params["bm2"][0]
    return (xf + h).astype(x.dtype)


def init_params(key, C, H):
    ks = jax.random.split(key, 6)
    s = 0.02
    return {
        "g1": jnp.ones((1, C), jnp.float32),
        "be1": jnp.zeros((1, C), jnp.float32),
        "wqkv": s * jax.random.normal(ks[0], (C, 3 * C), jnp.float32),
        "wproj": s * jax.random.normal(ks[1], (C, C), jnp.float32),
        "bproj": s * jax.random.normal(ks[2], (1, C), jnp.float32),
        "g2": jnp.ones((1, C), jnp.float32),
        "be2": jnp.zeros((1, C), jnp.float32),
        "w1": s * jax.random.normal(ks[3], (C, H), jnp.float32),
        "bm1": jnp.zeros((1, H), jnp.float32),
        "w2": s * jax.random.normal(ks[4], (H, C), jnp.float32),
        "bm2": jnp.zeros((1, C), jnp.float32),
    }


if __name__ == "__main__":
    B, N, C = 2, 16, 64
    num_heads = 4
    mlp_ratio = 4.0
    H = int(C * mlp_ratio)

    key = jax.random.PRNGKey(0)
    kx, kp = jax.random.split(key)
    x = jax.random.normal(kx, (B, N, C), jnp.float32)
    params = init_params(kp, C, H)

    prep = prepare_block_params(params, num_heads=num_heads)  # one-time weight prep
    out = vit_block(x, prep)
    out = jax.block_until_ready(out)

    ref = reference_block(x, params, num_heads=num_heads)
    assert out.shape == (B, N, C)
    # bf16 matmul inputs + approx reciprocal => slightly looser tolerance than f32.
    assert jnp.allclose(out, ref, atol=1e-2, rtol=1e-2), (
        float(jnp.max(jnp.abs(out - ref))))

    print("KERNEL_OK")
</pallas_src>

<mosaic_0001>
module attributes {stable_mosaic.version = 11 : i64} {
  func.func @attn_kernel(%arg0: i32, %arg1: i32, %arg2: memref<1x16x64xf32, #tpu.memory_space<vmem>>, %arg3: memref<1x64xf32, #tpu.memory_space<vmem>>, %arg4: memref<1x64xf32, #tpu.memory_space<vmem>>, %arg5: memref<1x64x192xbf16, #tpu.memory_space<vmem>>, %arg6: memref<1x16x64xbf16, #tpu.memory_space<vmem>>, %arg7: memref<16x64xbf16, #tpu.memory_space<vmem>>) attributes {dimension_semantics = [#tpu.dimension_semantics<parallel>, #tpu.dimension_semantics<arbitrary>], iteration_bounds = array<i64: 2, 1>, scalar_prefetch = 0 : i64, scratch_operands = 1 : i64, tpu.core_type = #tpu.core_type<tc>, window_params = [{transform_indices = @transform_0, window_bounds = array<i64: 1, 16, 64>}, {pipeline_mode = #tpu.pipeline_mode<synchronous>, transform_indices = @transform_1, window_bounds = array<i64: 1, 64>}, {pipeline_mode = #tpu.pipeline_mode<synchronous>, transform_indices = @transform_2, window_bounds = array<i64: 1, 64>}, {transform_indices = @transform_3, window_bounds = array<i64: 1, 64, 192>}, {transform_indices = @transform_4, window_bounds = array<i64: 1, 16, 64>}]} {
    %c0_i32 = arith.constant 0 : i32
    %0 = arith.cmpi eq, %arg1, %c0_i32 : i32
    %1 = arith.extui %0 : i1 to i32
    %c0_i32_0 = arith.constant 0 : i32
    %2 = arith.cmpi ne, %1, %c0_i32_0 : i32
    scf.if %2 {
      %c0_24 = arith.constant 0 : index
      %c0_25 = arith.constant 0 : index
      %c0_26 = arith.constant 0 : index
      %88 = vector.load %arg2[%c0_24, %c0_25, %c0_26] : memref<1x16x64xf32, #tpu.memory_space<vmem>>, vector<1x16x64xf32>
      %89 = vector.shape_cast %88 : vector<1x16x64xf32> to vector<16x64xf32>
      %c0_27 = arith.constant 0 : index
      %c0_28 = arith.constant 0 : index
      %90 = vector.load %arg3[%c0_27, %c0_28] : memref<1x64xf32, #tpu.memory_space<vmem>>, vector<1x64xf32>
      %91 = vector.shape_cast %90 : vector<1x64xf32> to vector<64xf32>
      %c0_29 = arith.constant 0 : index
      %c0_30 = arith.constant 0 : index
      %92 = vector.load %arg4[%c0_29, %c0_30] : memref<1x64xf32, #tpu.memory_space<vmem>>, vector<1x64xf32>
      %93 = vector.shape_cast %92 : vector<1x64xf32> to vector<64xf32>
      %cst_31 = arith.constant dense<0.000000e+00> : vector<16xf32>
      %94 = vector.multi_reduction <add>, %89, %cst_31 [1] : vector<16x64xf32> to vector<16xf32>
      %95 = vector.shape_cast %94 : vector<16xf32> to vector<16x1xf32>
      %cst_32 = arith.constant 6.400000e+01 : f32
      %96 = vector.broadcast %cst_32 : f32 to vector<16x1xf32>
      %97 = arith.divf %95, %96 : vector<16x1xf32>
      %98 = vector.broadcast %97 : vector<16x1xf32> to vector<16x64xf32>
      %99 = arith.subf %89, %98 : vector<16x64xf32>
      %100 = arith.mulf %99, %99 : vector<16x64xf32>
      %cst_33 = arith.constant dense<0.000000e+00> : vector<16xf32>
      %101 = vector.multi_reduction <add>, %100, %cst_33 [1] : vector<16x64xf32> to vector<16xf32>
      %102 = vector.shape_cast %101 : vector<16xf32> to vector<16x1xf32>
      %cst_34 = arith.constant 6.400000e+01 : f32
      %103 = vector.broadcast %cst_34 : f32 to vector<16x1xf32>
      %104 = arith.divf %102, %103 : vector<16x1xf32>
      %105 = vector.broadcast %97 : vector<16x1xf32> to vector<16x64xf32>
      %106 = arith.subf %89, %105 : vector<16x64xf32>
      %cst_35 = arith.constant 9.99999974E-6 : f32
      %107 = vector.broadcast %cst_35 : f32 to vector<16x1xf32>
      %108 = arith.addf %104, %107 : vector<16x1xf32>
      %109 = math.rsqrt %108 : vector<16x1xf32>
      %110 = vector.broadcast %109 : vector<16x1xf32> to vector<16x64xf32>
      %111 = arith.mulf %106, %110 : vector<16x64xf32>
      %112 = vector.shape_cast %91 : vector<64xf32> to vector<1x64xf32>
      %113 = vector.broadcast %112 : vector<1x64xf32> to vector<16x64xf32>
      %114 = arith.mulf %111, %113 : vector<16x64xf32>
      %115 = vector.shape_cast %93 : vector<64xf32> to vector<1x64xf32>
      %116 = vector.broadcast %115 : vector<1x64xf32> to vector<16x64xf32>
      %117 = arith.addf %114, %116 : vector<16x64xf32>
      %118 = arith.truncf %117 : vector<16x64xf32> to vector<16x64xbf16>
      %c0_36 = arith.constant 0 : index
      %c0_37 = arith.constant 0 : index
      %119 = vector.load %arg7[%c0_36, %c0_37] : memref<16x64xbf16, #tpu.memory_space<vmem>>, vector<16x64xbf16>
      tpu.vector_store %arg7[%c0_36, %c0_37], %118 {strides = array<i32>} : memref<16x64xbf16, #tpu.memory_space<vmem>>, vector<16x64xbf16>,
    } else {
    }
    %c0 = arith.constant 0 : index
    %c0_1 = arith.constant 0 : index
    %3 = vector.load %arg7[%c0, %c0_1] : memref<16x64xbf16, #tpu.memory_space<vmem>>, vector<16x64xbf16>
    %c0_2 = arith.constant 0 : index
    %c0_3 = arith.constant 0 : index
    %c0_4 = arith.constant 0 : index
    %4 = vector.load %arg5[%c0_2, %c0_3, %c0_4] : memref<1x64x192xbf16, #tpu.memory_space<vmem>>, vector<1x64x192xbf16>
    %5 = vector.shape_cast %4 : vector<1x64x192xbf16> to vector<64x192xbf16>
    %cst = arith.constant dense<0.000000e+00> : vector<16x192xf32>
    %6 = tpu.matmul %3, %5, %cst {dimension_numbers = #tpu.dot_dimension_numbers<[1], [0], [0], [1], [0, 0, 1, 1], [], []>} : vector<16x64xbf16>, vector<64x192xbf16>, vector<16x192xf32> -> vector<16x192xf32>
    %7 = vector.extract_strided_slice %6 {offsets = [0, 0], sizes = [16, 16], strides = [1, 1]} : vector<16x192xf32> to vector<16x16xf32>
    %8 = arith.truncf %7 : vector<16x16xf32> to vector<16x16xbf16>
    %9 = vector.extract_strided_slice %6 {offsets = [0, 64], sizes = [16, 16], strides = [1, 1]} : vector<16x192xf32> to vector<16x16xf32>
    %10 = arith.truncf %9 : vector<16x16xf32> to vector<16x16xbf16>
    %11 = vector.extract_strided_slice %6 {offsets = [0, 128], sizes = [16, 16], strides = [1, 1]} : vector<16x192xf32> to vector<16x16xf32>
    %12 = arith.truncf %11 : vector<16x16xf32> to vector<16x16xbf16>
    %cst_5 = arith.constant dense<0.000000e+00> : vector<16x16xf32>
    %13 = tpu.matmul %8, %10, %cst_5 {dimension_numbers = #tpu.dot_dimension_numbers<[1], [1], [0], [0], [0, 0, 1, 0], [], []>} : vector<16x16xbf16>, vector<16x16xbf16>, vector<16x16xf32> -> vector<16x16xf32>
    %cst_6 = arith.constant dense<0xFF800000> : vector<16xf32>
    %14 = vector.multi_reduction <maximumf>, %13, %cst_6 [1] : vector<16x16xf32> to vector<16xf32>
    %15 = vector.shape_cast %14 : vector<16xf32> to vector<16x1xf32>
    %16 = vector.broadcast %15 : vector<16x1xf32> to vector<16x16xf32>
    %17 = arith.subf %13, %16 : vector<16x16xf32>
    %18 = math.exp %17 : vector<16x16xf32>
    %cst_7 = arith.constant dense<0.000000e+00> : vector<16xf32>
    %19 = vector.multi_reduction <add>, %18, %cst_7 [1] : vector<16x16xf32> to vector<16xf32>
    %20 = vector.shape_cast %19 : vector<16xf32> to vector<16x1xf32>
    %21 = arith.truncf %18 : vector<16x16xf32> to vector<16x16xbf16>
    %cst_8 = arith.constant dense<0.000000e+00> : vector<16x16xf32>
    %22 = tpu.matmul %21, %12, %cst_8 {dimension_numbers = #tpu.dot_dimension_numbers<[1], [0], [0], [1], [0, 0, 1, 1], [], []>} : vector<16x16xbf16>, vector<16x16xbf16>, vector<16x16xf32> -> vector<16x16xf32>
    %23 = tpu.reciprocal %20 {approx = true} : vector<16x1xf32> -> vector<16x1xf32>
    %24 = vector.broadcast %23 : vector<16x1xf32> to vector<16x16xf32>
    %25 = arith.mulf %22, %24 : vector<16x16xf32>
    %26 = vector.extract_strided_slice %6 {offsets = [0, 16], sizes = [16, 16], strides = [1, 1]} : vector<16x192xf32> to vector<16x16xf32>
    %27 = arith.truncf %26 : vector<16x16xf32> to vector<16x16xbf16>
    %28 = vector.extract_strided_slice %6 {offsets = [0, 80], sizes = [16, 16], strides = [1, 1]} : vector<16x192xf32> to vector<16x16xf32>
    %29 = arith.truncf %28 : vector<16x16xf32> to vector<16x16xbf16>
    %30 = vector.extract_strided_slice %6 {offsets = [0, 144], sizes = [16, 16], strides = [1, 1]} : vector<16x192xf32> to vector<16x16xf32>
    %31 = arith.truncf %30 : vector<16x16xf32> to vector<16x16xbf16>
    %cst_9 = arith.constant dense<0.000000e+00> : vector<16x16xf32>
    %32 = tpu.matmul %27, %29, %cst_9 {dimension_numbers = #tpu.dot_dimension_numbers<[1], [1], [0], [0], [0, 0, 1, 0], [], []>} : vector<16x16xbf16>, vector<16x16xbf16>, vector<16x16xf32> -> vector<16x16xf32>
    %cst_10 = arith.constant dense<0xFF800000> : vector<16xf32>
    %33 = vector.multi_reduction <maximumf>, %32, %cst_10 [1] : vector<16x16xf32> to vector<16xf32>
    %34 = vector.shape_cast %33 : vector<16xf32> to vector<16x1xf32>
    %35 = vector.broadcast %34 : vector<16x1xf32> to vector<16x16xf32>
    %36 = arith.subf %32, %35 : vector<16x16xf32>
    %37 = math.exp %36 : vector<16x16xf32>
    %cst_11 = arith.constant dense<0.000000e+00> : vector<16xf32>
    %38 = vector.multi_reduction <add>, %37, %cst_11 [1] : vector<16x16xf32> to vector<16xf32>
    %39 = vector.shape_cast %38 : vector<16xf32> to vector<16x1xf32>
    %40 = arith.truncf %37 : vector<16x16xf32> to vector<16x16xbf16>
    %cst_12 = arith.constant dense<0.000000e+00> : vector<16x16xf32>
    %41 = tpu.matmul %40, %31, %cst_12 {dimension_numbers = #tpu.dot_dimension_numbers<[1], [0], [0], [1], [0, 0, 1, 1], [], []>} : vector<16x16xbf16>, vector<16x16xbf16>, vector<16x16xf32> -> vector<16x16xf32>
    %42 = tpu.reciprocal %39 {approx = true} : vector<16x1xf32> -> vector<16x1xf32>
    %43 = vector.broadcast %42 : vector<16x1xf32> to vector<16x16xf32>
    %44 = arith.mulf %41, %43 : vector<16x16xf32>
    %45 = vector.extract_strided_slice %6 {offsets = [0, 32], sizes = [16, 16], strides = [1, 1]} : vector<16x192xf32> to vector<16x16xf32>
    %46 = arith.truncf %45 : vector<16x16xf32> to vector<16x16xbf16>
    %47 = vector.extract_strided_slice %6 {offsets = [0, 96], sizes = [16, 16], strides = [1, 1]} : vector<16x192xf32> to vector<16x16xf32>
    %48 = arith.truncf %47 : vector<16x16xf32> to vector<16x16xbf16>
    %49 = vector.extract_strided_slice %6 {offsets = [0, 160], sizes = [16, 16], strides = [1, 1]} : vector<16x192xf32> to vector<16x16xf32>
    %50 = arith.truncf %49 : vector<16x16xf32> to vector<16x16xbf16>
    %cst_13 = arith.constant dense<0.000000e+00> : vector<16x16xf32>
    %51 = tpu.matmul %46, %48, %cst_13 {dimension_numbers = #tpu.dot_dimension_numbers<[1], [1], [0], [0], [0, 0, 1, 0], [], []>} : vector<16x16xbf16>, vector<16x16xbf16>, vector<16x16xf32> -> vector<16x16xf32>
    %cst_14 = arith.constant dense<0xFF800000> : vector<16xf32>
    %52 = vector.multi_reduction <maximumf>, %51, %cst_14 [1] : vector<16x16xf32> to vector<16xf32>
    %53 = vector.shape_cast %52 : vector<16xf32> to vector<16x1xf32>
    %54 = vector.broadcast %53 : vector<16x1xf32> to vector<16x16xf32>
    %55 = arith.subf %51, %54 : vector<16x16xf32>
    %56 = math.exp %55 : vector<16x16xf32>
    %cst_15 = arith.constant dense<0.000000e+00> : vector<16xf32>
    %57 = vector.multi_reduction <add>, %56, %cst_15 [1] : vector<16x16xf32> to vector<16xf32>
    %58 = vector.shape_cast %57 : vector<16xf32> to vector<16x1xf32>
    %59 = arith.truncf %56 : vector<16x16xf32> to vector<16x16xbf16>
    %cst_16 = arith.constant dense<0.000000e+00> : vector<16x16xf32>
    %60 = tpu.matmul %59, %50, %cst_16 {dimension_numbers = #tpu.dot_dimension_numbers<[1], [0], [0], [1], [0, 0, 1, 1], [], []>} : vector<16x16xbf16>, vector<16x16xbf16>, vector<16x16xf32> -> vector<16x16xf32>
    %61 = tpu.reciprocal %58 {approx = true} : vector<16x1xf32> -> vector<16x1xf32>
    %62 = vector.broadcast %61 : vector<16x1xf32> to vector<16x16xf32>
    %63 = arith.mulf %60, %62 : vector<16x16xf32>
    %64 = vector.extract_strided_slice %6 {offsets = [0, 48], sizes = [16, 16], strides = [1, 1]} : vector<16x192xf32> to vector<16x16xf32>
    %65 = arith.truncf %64 : vector<16x16xf32> to vector<16x16xbf16>
    %66 = vector.extract_strided_slice %6 {offsets = [0, 112], sizes = [16, 16], strides = [1, 1]} : vector<16x192xf32> to vector<16x16xf32>
    %67 = arith.truncf %66 : vector<16x16xf32> to vector<16x16xbf16>
    %68 = vector.extract_strided_slice %6 {offsets = [0, 176], sizes = [16, 16], strides = [1, 1]} : vector<16x192xf32> to vector<16x16xf32>
    %69 = arith.truncf %68 : vector<16x16xf32> to vector<16x16xbf16>
    %cst_17 = arith.constant dense<0.000000e+00> : vector<16x16xf32>
    %70 = tpu.matmul %65, %67, %cst_17 {dimension_numbers = #tpu.dot_dimension_numbers<[1], [1], [0], [0], [0, 0, 1, 0], [], []>} : vector<16x16xbf16>, vector<16x16xbf16>, vector<16x16xf32> -> vector<16x16xf32>
    %cst_18 = arith.constant dense<0xFF800000> : vector<16xf32>
    %71 = vector.multi_reduction <maximumf>, %70, %cst_18 [1] : vector<16x16xf32> to vector<16xf32>
    %72 = vector.shape_cast %71 : vector<16xf32> to vector<16x1xf32>
    %73 = vector.broadcast %72 : vector<16x1xf32> to vector<16x16xf32>
    %74 = arith.subf %70, %73 : vector<16x16xf32>
    %75 = math.exp %74 : vector<16x16xf32>
    %cst_19 = arith.constant dense<0.000000e+00> : vector<16xf32>
    %76 = vector.multi_reduction <add>, %75, %cst_19 [1] : vector<16x16xf32> to vector<16xf32>
    %77 = vector.shape_cast %76 : vector<16xf32> to vector<16x1xf32>
    %78 = arith.truncf %75 : vector<16x16xf32> to vector<16x16xbf16>
    %cst_20 = arith.constant dense<0.000000e+00> : vector<16x16xf32>
    %79 = tpu.matmul %78, %69, %cst_20 {dimension_numbers = #tpu.dot_dimension_numbers<[1], [0], [0], [1], [0, 0, 1, 1], [], []>} : vector<16x16xbf16>, vector<16x16xbf16>, vector<16x16xf32> -> vector<16x16xf32>
    %80 = tpu.reciprocal %77 {approx = true} : vector<16x1xf32> -> vector<16x1xf32>
    %81 = vector.broadcast %80 : vector<16x1xf32> to vector<16x16xf32>
    %82 = arith.mulf %79, %81 : vector<16x16xf32>
    %83 = tpu.concatenate %25, %44, %63, %82 in 1 : vector<16x16xf32>, vector<16x16xf32>, vector<16x16xf32>, vector<16x16xf32> -> vector<16x64xf32>
    %84 = arith.truncf %83 : vector<16x64xf32> to vector<16x64xbf16>
    %c0_21 = arith.constant 0 : index
    %c0_22 = arith.constant 0 : index
    %c0_23 = arith.constant 0 : index
    %85 = vector.load %arg6[%c0_21, %c0_22, %c0_23] : memref<1x16x64xbf16, #tpu.memory_space<vmem>>, vector<1x16x64xbf16>
    %86 = vector.shape_cast %85 : vector<1x16x64xbf16> to vector<16x64xbf16>
    %87 = vector.shape_cast %84 : vector<16x64xbf16> to vector<1x16x64xbf16>
    tpu.vector_store %arg6[%c0_21, %c0_22, %c0_23], %87 {strides = array<i32>} : memref<1x16x64xbf16, #tpu.memory_space<vmem>>, vector<1x16x64xbf16>,
    return
  }
  func.func @transform_0(%arg0: i32, %arg1: i32) -> (i32, i32, i32) {
    %c0_i32 = arith.constant 0 : i32
    %c0_i32_0 = arith.constant 0 : i32
    %c0_i32_1 = arith.constant 0 : i32
    return %arg0, %c0_i32, %c0_i32_0 : i32, i32, i32
  }
  func.func @transform_1(%arg0: i32, %arg1: i32) -> (i32, i32) {
    %c0_i32 = arith.constant 0 : i32
    %c0_i32_0 = arith.constant 0 : i32
    %c0_i32_1 = arith.constant 0 : i32
    return %c0_i32, %c0_i32_0 : i32, i32
  }
  func.func @transform_2(%arg0: i32, %arg1: i32) -> (i32, i32) {
    %c0_i32 = arith.constant 0 : i32
    %c0_i32_0 = arith.constant 0 : i32
    %c0_i32_1 = arith.constant 0 : i32
    return %c0_i32, %c0_i32_0 : i32, i32
  }
  func.func @transform_3(%arg0: i32, %arg1: i32) -> (i32, i32, i32) {
    %c0_i32 = arith.constant 0 : i32
    %c0_i32_0 = arith.constant 0 : i32
    %c0_i32_1 = arith.constant 0 : i32
    return %arg1, %c0_i32, %c0_i32_0 : i32, i32, i32
  }
  func.func @transform_4(%arg0: i32, %arg1: i32) -> (i32, i32, i32) {
    %c0_i32 = arith.constant 0 : i32
    %c0_i32_0 = arith.constant 0 : i32
    return %arg0, %c0_i32, %arg1 : i32, i32, i32
  }
}

</mosaic_0001>

<bundles_post_ra>
// kernel: tpu_custom_call.1
= control target key start
LH: loop header
LB: loop body
LE: loop exit
PB: predicated region body
PF: predicated region fallthrough
CT: control target
= control target key end

     0   :  { %9 = vsyncpa [#allocation4], 0  ;;  %s1987_s0 = inlined_call_operand.hbm [shape: f32[2,16,64], index: 0, kind: input, shape index: {}]   ;;  %s1988_s1 = inlined_call_operand.hbm [shape: f32[1,64], index: 1, kind: input, shape index: {}]   ;;  %s1989_s2 = inlined_call_operand.hbm [shape: f32[1,64], index: 2, kind: input, shape index: {}]   ;;  %s1990_s3 = inlined_call_operand.hbm [shape: bf16[1,64,192], index: 3, kind: input, shape index: {}]   ;;  %s1991_s4 = inlined_call_operand.hbm [shape: bf16[2,16,64], index: 4, kind: output, shape index: {}]  }
   0x1   :  { %11 = vsyncpa [#allocation4 + $0x1], 0 }
   0x2   :  { %12 = vsyncpa [#allocation7], 0 }
   0x3   :  { %13 = vsyncpa [#allocation10], 0 }
   0x4   :  { %14 = vsyncpa [#allocation5], 0 }
   0x5   :  { %16 = vsyncpa [#allocation5 + $0x1], 0  ;;  %s1613_s15 = smov 0   ;;  %s1615_s16 = smov 0  }
   0x6   :  { %s1617_s17 = smov 0   ;;  %s1619_s18 = smov 0  }
   0x7   :  { %s1621_s19 = smov 0   ;;  %s1623_s20 = smov 0  }
   0x8 LB: > { %s1085_s21 = sadd.s32 4294967295, %s1568_s20   ;;  %s1086_s22 = sadd.s32 4294967294, %s1568_s20   ;;  %s1568_s20 = sphi %s1623_s20, %s22_s20   ;;  %s1564_s19 = sphi %s1621_s19, %s2015_s19   ;;  %s1560_s18 = sphi %s1619_s18, %s2014_s18   ;;  %s1556_s17 = sphi %s1617_s17, %s2013_s17   ;;  %s1552_s16 = sphi %s1615_s16, %s2012_s16   ;;  %s1548_s15 = sphi %s1613_s15, %s2011_s15  }
   0x9   : > { %p54_p0 = scmp.ne.s32.totalorder %s1552_s16, %s1548_s15  ;;  %p1647_p1 = scmp.eq.s32.totalorder %s1085_s21, 0 }
   0xa   : > { %p1651_p2 = scmp.eq.s32.totalorder %s1085_s21, 1  ;;  %p154_p3 = scmp.eq.s32.totalorder %s1086_s22, 1 }
   0xb   : > { %s1996_s23 = scalar_select %p1647_p1, 1, 0 }
   0xc   : > { %s1997_s24 = scalar_select %p1651_p2, 1, 0 }
   0xd   : > { %p1657_p4 = por %p1647_p1, %p54_p0  ;;  %p1087_p5 = scmp.ge.s32.totalorder %s1568_s20, 1 }
   0xe   : > { %p1662_p6 = por %p154_p3, %p54_p0  ;;  %p161_p7 = scmp.lt.s32.totalorder %s1568_s20, 3 }
   0xf   : > { %s1998_s25 = scalar_select %p1657_p4, 1, 0 }
  0x10   : > { %s1999_s26 = scalar_select %p1662_p6, 1, 0 }
  0x11   : > { %p1667_p8 = pnand %p1087_p5, %p161_p7  ;;  %s1570_s28 = smov [#allocation6]  }
  0x12   : > { %s174_s29 = sshll.u32 %s1570_s28, 4  ;;  %s1571_s30 = smov [#allocation8]   ;;  %s175_s29 = int_to_ptr.vmem [resolvable:$true] %s174_s29 }
  0x13   : > { %s2000_s27 = scalar_select %p1667_p8, 1, 0 }
  0x14   : > { %p1211_p10 = pneg %p1667_p8  ;;  %s185_s5 = sshll.u32 %s1571_s30, 4  ;;  %s1680_s5 = int_to_ptr.vmem [resolvable:$true] %s185_s5 }
  0x15   : > { %s1572_s7 = smov [#allocation9]   ;;  %s1364_s11 = scalar_lea.hbm %s1988_s1, 16 }
  0x16   : > { %p1676_p11 = pnand %p1211_p10, %p1647_p1  ;;  %s198_s8 = sshll.u32 %s1572_s7, 4  ;;  %s1682_s8 = int_to_ptr.vmem [resolvable:$true] %s198_s8 }
  0x17   : > { %p1365_p12 = scmp.ne.s32.totalorder %s1988_s1, %s1364_s11  ;;  %p1371_p5 = scmp.lt.u32.totalorder %s1364_s11, %s1988_s1 }
  0x18   : > { %p1692_p13 = pneg %p1676_p11 }
  0x1a   : > { %p1367_p0 = pnand %p1692_p13, %p1365_p12 }
  0x1c   : > { %p1368_p3 = pneg %p1367_p0 }
  0x1e   : > { %p1373_p7 = pnand %p1371_p5, %p1368_p3 }
  0x20   : > { %1376 = shalt.err (!%p1373_p7)
}
  0x21   : > { %s1377_s28 = scalar_lea.vmem %s175_s29, 16  ;;  %s1384_s30 = scalar_lea.vmem %s175_s29, 32 }
  0x22   : > { %p1378_p10 = scmp.ne.s32.totalorder %s175_s29, %s1377_s28  ;;  %p1385_p1 = scmp.lt.s32.totalorder %s175_s29, %s175_s29 }
  0x23   : > { %p1386_p4 = scmp.lt.s32.totalorder %s1384_s30, %s1377_s28 }
  0x24   : > { %p1380_p9 = pnand %p1378_p10, %p1692_p13 }
  0x25   : > { %p1387_p8 = por %p1386_p4, %p1385_p1 }
  0x26   : > { %p1381_p6 = pneg %p1380_p9 }
  0x28   : > { %p1388_p2 = pnand %p1387_p8, %p1381_p6 }
  0x2a   : > { %1391 = shalt.err (!%p1388_p2)
}
  0x2b   : > { %1214 = dma.hbm_to_vmem [thread:$0]  (!%p1676_p11), %s1988_s1, 16, %s175_s29, [#allocation7]  }
  0x2c   : > { %s1392_s12 = scalar_lea.hbm %s1989_s2, 16 }
  0x2d   : > { %p1393_p9 = scmp.ne.s32.totalorder %s1989_s2, %s1392_s12  ;;  %p1399_p2 = scmp.lt.u32.totalorder %s1392_s12, %s1989_s2 }
  0x2f   : > { %p1395_p12 = pnand %p1393_p9, %p1692_p13 }
  0x31   : > { %p1396_p1 = pneg %p1395_p12 }
  0x33   : > { %p1401_p4 = pnand %p1399_p2, %p1396_p1 }
  0x35   : > { %1404 = shalt.err (!%p1401_p4)
}
  0x36   : > { %s1405_s29 = scalar_lea.vmem %s1680_s5, 16  ;;  %s1412_s30 = scalar_lea.vmem %s1680_s5, 32 }
  0x37   : > { %p1406_p6 = scmp.ne.s32.totalorder %s1680_s5, %s1405_s29  ;;  %p1413_p3 = scmp.lt.s32.totalorder %s1680_s5, %s1680_s5 }
  0x38   : > { %p1414_p5 = scmp.lt.s32.totalorder %s1412_s30, %s1405_s29 }
  0x39   : > { %p1408_p8 = pnand %p1406_p6, %p1692_p13 }
  0x3a   : > { %p1415_p7 = por %p1414_p5, %p1413_p3 }
  0x3b   : > { %p1409_p0 = pneg %p1408_p8 }
  0x3d   : > { %p1416_p10 = pnand %p1415_p7, %p1409_p0 }
  0x3f   : > { %1419 = shalt.err (!%p1416_p10)
}
  0x40   : > { %1217 = dma.hbm_to_vmem [thread:$0]  (!%p1676_p11), %s1989_s2, 16, %s1680_s5, [#allocation7]  }
  0x41   : > { %s1420_s12 = scalar_lea.hbm %s1990_s3, 1024 }
  0x42   : > { %p1421_p9 = scmp.ne.s32.totalorder %s1990_s3, %s1420_s12  ;;  %p1427_p2 = scmp.lt.u32.totalorder %s1420_s12, %s1990_s3 }
  0x44   : > { %p1423_p12 = pnand %p1421_p9, %p1692_p13 }
  0x46   : > { %p1424_p1 = pneg %p1423_p12 }
  0x48   : > { %p1429_p4 = pnand %p1427_p2, %p1424_p1 }
  0x4a   : > { %1432 = shalt.err (!%p1429_p4)
}
  0x4b   : > { %s1433_s5 = scalar_lea.vmem %s1682_s8, 1024  ;;  %p1441_p3 = scmp.lt.s32.totalorder %s1682_s8, %s1682_s8 }
  0x4c   : > { %p1434_p6 = scmp.ne.s32.totalorder %s1682_s8, %s1433_s5  ;;  %p1442_p5 = scmp.lt.s32.totalorder %s1433_s5, %s1433_s5 }
  0x4e   : > { %p1436_p8 = pnand %p1434_p6, %p1692_p13  ;;  %p1443_p7 = por %p1442_p5, %p1441_p3 }
  0x50   : > { %p1437_p0 = pneg %p1436_p8 }
  0x52   : > { %p1444_p10 = pnand %p1443_p7, %p1437_p0 }
  0x54   : > { %1447 = shalt.err (!%p1444_p10)
}
  0x55   : > { %s1573_s29 = smov 128   ;;  %s1574_s14 = smov 8  }
  0x56   : > { %1220 = dma.hbm_to_vmem [thread:$0]  (!%p1676_p11), %s1990_s3, 1024, %s1682_s8, [#allocation10], %s1573_s29, %s1573_s29, %s1574_s14  }
  0x57   : > { %s41_s9 = sadd.s32 1, %s1556_s17  ;;  %s34_s10 = sadd.s32 1, %s1564_s19 }
  0x58   : > { %p48_p13 = scmp.ne.s32.totalorder %s1556_s17, %s1552_s16  ;;  %p36_p9 = scmp.ge.s32.totalorder %s34_s10, 2 }
  0x59   : > { %p49_p12 = scmp.eq.s32.totalorder %s1568_s20, 0  ;;  %p2003_p1 = scmp.ne.s32.totalorder %s1997_s24, 0 }
  0x5a   : > { %p1232_p4 = scmp.lt.s32.totalorder %s1568_s20, 2  ;;  %s2017_s10 = smov (%p36_p9, %s34_s10), 0 }
  0x5b   : > { %p1765_p2 = por %p2003_p1, %p48_p13  ;;  %p50_p6 = por %p49_p12, %p48_p13 }
  0x5c   : > { %s212_s6 = sand.u32 1, %s1556_s17   ;;  %s38_s12 = ssub.s32 %s1564_s19, %s2017_s10 }
  0x5d   : > { %p39_p8 = scmp.eq.s32.totalorder %s38_s12, 0  ;;  %s1092_s8 = sshll.u32 %s212_s6, 4 }
  0x5e   : > { %s1127_s13 = sshll.u32 %s1564_s19, 8  ;;  %s216_s5 = scalar_lea.vmem [#allocation3], %s1092_s8 }
  0x5f   : > { %s1777_s21 = scalar_select %p39_p8, %s1556_s17, %s41_s9  }
  0x60   : > { %s1782_s24 = scalar_lea.hbm %s1987_s0, %s1127_s13  ;;  %s223_s30 = sshll.u32 %s216_s5, 4  ;;  %s1784_s30 = int_to_ptr.vmem [resolvable:$true] %s223_s30 }
  0x61   : > { %p1788_p11 = pnand %p1232_p4, %p50_p6  ;;  %s1792_s9 = scalar_lea.sflag [#allocation4], %s212_s6 }
  0x62   : > { %s1448_s12 = scalar_lea.hbm %s1782_s24, 256  ;;  %s1453_s22 = scalar_lea.hbm %s1987_s0, 512 }
  0x63   : > { %p1449_p0 = scmp.ne.s32.totalorder %s1782_s24, %s1448_s12  ;;  %p1450_p3 = pneg %p1788_p11 }
  0x64   : > { %p1454_p10 = scmp.lt.u32.totalorder %s1782_s24, %s1987_s0  ;;  %p1455_p13 = scmp.lt.u32.totalorder %s1453_s22, %s1448_s12 }
  0x65   : > { %p1451_p5 = pnand %p1450_p3, %p1449_p0  ;;  %p1457_p12 = scmp.lt.u32.totalorder %s1448_s12, %s1782_s24 }
  0x66   : > { %p1456_p9 = por %p1455_p13, %p1454_p10 }
  0x67   : > { %p1452_p7 = pneg %p1451_p5 }
  0x68   : > { %p1458_p1 = por %p1457_p12, %p1456_p9 }
  0x6a   : > { %p1459_p4 = pnand %p1458_p1, %p1452_p7 }
  0x6c   : > { %1462 = shalt.err (!%p1459_p4)
}
  0x6d   : > { %s1463_s6 = scalar_lea.vmem %s1784_s30, 256  ;;  %s1575_s8 = smov [#allocation3]  }
  0x6e   : > { %p1464_p6 = scmp.ne.s32.totalorder %s1784_s30, %s1463_s6  ;;  %s1468_s13 = sshll.u32 %s1575_s8, 4  ;;  %s1469_s13 = int_to_ptr.vmem [resolvable:$false] %s1468_s13 }
  0x6f   : > { %s1470_s28 = scalar_lea.vmem %s1469_s13, 512  ;;  %p1471_p5 = scmp.lt.s32.totalorder %s1784_s30, %s1469_s13 }
  0x70   : > { %p1466_p8 = pnand %p1464_p6, %p1450_p3  ;;  %p1472_p10 = scmp.lt.s32.totalorder %s1470_s28, %s1463_s6 }
  0x72   : > { %p1467_p0 = pneg %p1466_p8  ;;  %p1473_p13 = por %p1472_p10, %p1471_p5 }
  0x74   : > { %p1474_p9 = pnand %p1473_p13, %p1467_p0 }
  0x76   : > { %1477 = shalt.err (!%p1474_p9)
}
  0x77   : > { %1224 = dma.hbm_to_vmem [thread:$0]  (!%p1788_p11), %s1782_s24, 256, %s1784_s30, %s1792_s9, %s1573_s29, %s1573_s29, %s1574_s14  }
  0x78   : > { %p2006_p3 = scmp.ne.s32.totalorder %s2000_s27, 0 }
  0x79   : > { %s1826_s12 = sand.u32 (!%p2006_p3), 1, %s1552_s16   ;;  %p2007_p7 = scmp.ne.s32.totalorder (!%p2006_p3), %s1998_s25, 0 }
  0x7a   : > { %235 = sbr.rel (%p2006_p3) target bundleno = 1588 (0x634), region = 36  ;;  %s1096_s22 = sshll.u32 (!%p2006_p3), %s1826_s12, 4 }
  0x7b   : > { %s238_s5 = scalar_lea.sflag (!%p2006_p3), [#allocation4], %s1826_s12  ;;  %s241_s6 = scalar_lea.vmem (!%p2006_p3), [#allocation3], %s1096_s22 }
  0x81   : > { %1531 = dma.done.wait (%p2007_p7), %s238_s5, 256  }
  0x82   : > { %1533 = vsyncadd (%p2007_p7), %s238_s5, 4294967040  ;;  %p2008_p12 = scmp.ne.s32.totalorder %s1996_s23, 0 }
  0x84   : > { %1535 = dma.done.wait (%p2008_p12), [#allocation7], 32  }
  0x85   : > { %1537 = vsyncadd (%p2008_p12), [#allocation7], 4294967264 }
  0x86   : > { %1539 = dma.done.wait (%p2008_p12), [#allocation10], 1024  }
  0x87   : > { %1541 = vsyncadd (%p2008_p12), [#allocation10], 4294966272  ;;  %vm287_vm0 = vcmask 523264   ;;  %v283_v0 = vld [vmem:[%s241_s6] sm:$0xff]  ;;  %v284_v1 = vld [vmem:[%s241_s6 + $0x8] sm:$0xff]  ;;  %v1576_v22 = vmov 0  }
  0x88   : > { %v288_v2 = vsel %vm287_vm0, %v283_v0, 0.0  ;;  %v291_v3 = vsel %vm287_vm0, %v284_v1, 0.0  ;;  %v1316_v14 = vld [vmem:[#allocation9 + $0x4] ss:$8 sps:$4 sm:$0xff]   ;;  %v1318_v15 = vld [vmem:[#allocation9] ss:$8 sps:$4 sm:$0xff]   ;;  %418 = vmatprep.mubr.bf16.mxu0 %v1576_v22 }
  0x89   : > { %289 = vadd.xlane.f32.xlu0 %v288_v2  ;;  %386 = vmatprep.subr.bf16.mxu0 %v1316_v14  ;;  %v1319_v16 = vld [vmem:[#allocation9 + $0x14] ss:$8 sps:$4 sm:$0xff]   ;;  %v1321_v17 = vld [vmem:[#allocation9 + $0x10] ss:$8 sps:$4 sm:$0xff]   ;;  %v1322_v18 = vld [vmem:[#allocation9 + $0x24] ss:$8 sps:$4 sm:$0xff]  }
  0x8a   : > { %387 = vmatpush1.bf16.msra.mxu0 %v1318_v15  ;;  %v1324_v19 = vld [vmem:[#allocation9 + $0x20] ss:$8 sps:$4 sm:$0xff]   ;;  %v1325_v20 = vld [vmem:[#allocation9 + $0x34] ss:$8 sps:$4 sm:$0xff]   ;;  %v1327_v21 = vld [vmem:[#allocation9 + $0x30] ss:$8 sps:$4 sm:$0xff]  }
  0x8b   : > { %388 = vmatprep.subr.bf16.mxu0 %v1319_v16  ;;  %v1101_v31 = vld [vmem:[#allocation6] ss:$0 sm:$0xff]  ;;  %v1102_v35 = vld [vmem:[#allocation8] ss:$0 sm:$0xff]  ;;  %v1577_v41 = vmov 0.0   ;;  %vm1578_vm1 = vmmov 0  }
  0x8c   : > { %1147 = vmatprep.subr.bf16.mxu1 %v1577_v41  ;;  %1149 = vmatprep.mubr.msk.bf16.mxu1 %vm1578_vm1, %v1577_v41  ;;  %s1579_s23 = smov 48   ;;  %s1580_s25 = smov 64   ;;  %vm434_vm2 = vcmask 130048   ;;  %vm939_vm3 = vcmask 261120   ;;  %vm942_vm4 = vcmask 392192   ;;  %vm953_vm5 = vcmask 519168  }
  0x8d   : > { %292 = vadd.xlane.f32.xlu0 %v291_v3  ;;  %s1581_s27 = smov 112   ;;  %s1582_s29 = smov 96  }
  0x8e   : > { %389 = vmatpush1.bf16.msra.mxu0 %v1321_v17  ;;  %s1583_s14 = smov 32   ;;  %s1584_s24 = smov 80  }
  0x8f   : > { %390 = vmatprep.subr.bf16.mxu0 %v1322_v18  ;;  %s1585_s30 = smov 16   ;;  %s1100_s7 = sshll.u32 %s1826_s12, 3 }
  0x90   : > { %s1130_s9 = sshll.u32 %s1560_s18, 7  ;;  %s277_s8 = scalar_lea.vmem [#allocation11], %s1100_s7 }
  0x91   : > { %s971_s13 = sshll.u32 %s277_s8, 4  ;;  %s1934_s5 = scalar_lea.hbm %s1991_s4, %s1130_s9  ;;  %s1936_s13 = int_to_ptr.vmem [resolvable:$true] %s971_s13 }
  0x92   : > { %391 = vmatpush1.bf16.msra.mxu0 %v1324_v19  ;;  %s957_s18 = scalar_lea.sflag [#allocation5], %s1826_s12  ;;  %s1478_s6 = scalar_lea.vmem %s1936_s13, 128 }
  0x93   : > { %392 = vmatprep.subr.bf16.mxu0 %v1325_v20  ;;  %p1479_p11 = scmp.ne.s32.totalorder %s1936_s13, %s1478_s6 }
  0x95   : > { %p1480_p1 = pnand %p1479_p11, %p1765_p2 }
  0x96   : > { %393 = vmatpush1.bf16.msra.mxu0 %v1327_v21 }
  0x97   : > { %1159 = vmatprep.subr.bf16.mxu0 %v1577_v41  ;;  %p1481_p4 = pneg %p1480_p1 }
 0x116   : > { %v290_v4 = vpop.xlane.xlu0 %289 }
 0x117   : > { %v295_v5 = vmul.f32 0.015625, %v290_v4 }
 0x119   : > { %v297_v6 = vsub.f32 %v283_v0, %v295_v5 }
 0x11a   : > { %v293_v7 = vpop.xlane.xlu0 %292 }
 0x11b   : > { %v296_v8 = vmul.f32 0.015625, %v293_v7  ;;  %v299_v9 = vmul.f32 %v297_v6, %v297_v6 }
 0x11d   : > { %v298_v10 = vsub.f32 %v284_v1, %v296_v8  ;;  %v301_v11 = vsel %vm287_vm0, %v299_v9, 0.0 }
 0x11e   : > { %302 = vadd.xlane.f32.xlu1 %v301_v11 }
 0x11f   : > { %v300_v12 = vmul.f32 %v298_v10, %v298_v10 }
 0x121   : > { %v304_v13 = vsel %vm287_vm0, %v300_v12, 0.0 }
 0x122   : > { %305 = vadd.xlane.f32.xlu1 %v304_v13 }
 0x1ab   : > { %v303_v23 = vpop.xlane.xlu1 %302 }
 0x1ac   : > { %v307_v24 = vmul.f32 0.015625, %v303_v23 }
 0x1ae   : > { %v309_v25 = vadd.f32 1e-05, %v307_v24 }
 0x1af   : > { %v306_v26 = vpop.xlane.xlu1 %305 }
 0x1b0   : > { %1328 = vrsqrt.f32 %v309_v25  ;;  %v308_v27 = vmul.f32 0.015625, %v306_v26 }
 0x1b2   : > { %v310_v28 = vadd.f32 1e-05, %v308_v27 }
 0x1b4   : > { %1330 = vrsqrt.f32 %v310_v28 }
 0x1ba   : > { %v1329_v29 = vpop.eup %1328 }
 0x1bb   : > { %v313_v30 = vmul.f32 %v1329_v29, %v297_v6 }
 0x1bd   : > { %v321_v33 = vmul.f32 %v1101_v31, %v313_v30 }
 0x1be   : > { %v1331_v32 = vpop.eup %1330 }
 0x1bf   : > { %v314_v34 = vmul.f32 %v1331_v32, %v298_v10  ;;  %v329_v37 = vadd.f32 %v1102_v35, %v321_v33 }
 0x1c1   : > { %v322_v36 = vmul.f32 %v1101_v31, %v314_v34 }
 0x1c3   : > { %v330_v38 = vadd.f32 %v1102_v35, %v322_v36 }
 0x1c5   : > { %v331_v39 = vpack.c.bf16 %v330_v38, %v329_v37 }
 0x1c7   : > { %332 = vst.msk [vmem:[#allocation2] sm:$0xff] %vm287_vm0, %v331_v39 }
 0x1ce   : > { %v333_v40 = vld [vmem:[#allocation2] sm:$0xff] }
 0x1cf   : > { %1111 = vmatmul.mubr.msk.bf16.vlgmr.msra.gmra.mrb[0].mxu0 %vm287_vm0, %v333_v40 }
 0x1d0   : > { %1161 = vmatprep.mubr.msk.bf16.mxu0 %vm1578_vm1, %v1577_v41 }
 0x2a2   : > { %v420_v42 = vpop.f32.mrb[0].mxu0 }
 0x2a3   : > { %v422_v43 = vpop.f32.mrb[1].mxu0 }
 0x2a4   : > { %v424_v44 = vpop.f32.mrb[2].mxu0 }
 0x2a5   : > { %v429_v45 = vpack.c.bf16 %v424_v44, %v420_v42  ;;  %v426_v46 = vpop.f32.mrb[3].mxu0 }
 0x2a6   : > { %v1854_v47 = vpack.c.bf16 %v426_v46, %v422_v43 }
 0x2a7   : > { %551 = vrot.lane.b32.xlu1 %v429_v45, %s1579_s23  ;;  %432 = vrot.lane.b32.xlu0 %v429_v45, %s1580_s25 }
 0x2ab   : > { %549 = vrot.lane.b32.xlu1 %v429_v45, %s1581_s27  ;;  %671 = vrot.lane.b32.xlu0 %v429_v45, %s1582_s29 }
 0x2af   : > { %673 = vrot.lane.b32.xlu1 %v429_v45, %s1583_s14  ;;  %792 = vrot.lane.b32.xlu0 %v429_v45, %s1584_s24 }
 0x2b3   : > { %794 = vrot.lane.b32.xlu1 %v429_v45, %s1585_s30 }
 0x319   : > { %v552_v48 = vpop.permute.xlu1 %551  ;;  %v433_v49 = vpop.permute.xlu0 %432 }
 0x31a   : > { %v557_v50 = vsel %vm434_vm2, %v552_v48, 0  ;;  %v439_v51 = vsel %vm434_vm2, %v433_v49, 0 }
 0x31b   : > { %1148 = vmatpush3.bf16.xpose.msra.mxu1 %v439_v51  ;;  %1160 = vmatpush3.bf16.xpose.msra.mxu0 %v557_v50 }
 0x31c   : > { %1153 = vmatprep.subr.bf16.mxu1 %v1577_v41  ;;  %1171 = vmatprep.subr.bf16.mxu0 %v1577_v41 }
 0x31d   : > { %v550_v52 = vpop.permute.xlu1 %549  ;;  %v672_v56 = vpop.permute.xlu0 %671 }
 0x321   : > { %v674_v53 = vpop.permute.xlu1 %673  ;;  %v793_v58 = vpop.permute.xlu0 %792 }
 0x322   : > { %v679_v54 = vsel %vm434_vm2, %v674_v53, 0  ;;  %1150 = vmatmul.mubr.msk.bf16.vlgmr.msra.gmra.mrb[0].mxu1 %vm434_vm2, %v429_v45  ;;  %1162 = vmatmul.mubr.msk.bf16.vlgmr.msra.gmra.mrb[4].mxu0 %vm434_vm2, %v550_v52 }
 0x323   : > { %1154 = vmatpush3.bf16.msra.mxu1 %v1854_v47  ;;  %1172 = vmatpush3.bf16.xpose.msra.mxu0 %v679_v54 }
 0x324   : > { %1173 = vmatprep.mubr.msk.bf16.mxu0 %vm1578_vm1, %v1577_v41  ;;  %1183 = vmatprep.subr.bf16.mxu0 %v1577_v41 }
 0x325   : > { %1155 = vmatprep.mubr.msk.bf16.mxu1 %vm1578_vm1, %v1577_v41  ;;  %1165 = vmatprep.subr.bf16.mxu1 %v1577_v41  ;;  %v795_v55 = vpop.permute.xlu1 %794 }
 0x326   : > { %v800_v57 = vsel %vm434_vm2, %v795_v55, 0 }
 0x32a   : > { %1174 = vmatmul.mubr.msk.bf16.vlgmr.msra.gmra.mrb[8].mxu0 %vm434_vm2, %v672_v56 }
 0x32b   : > { %1184 = vmatpush3.bf16.xpose.msra.mxu0 %v800_v57  ;;  %1185 = vmatprep.mubr.msk.bf16.mxu0 %vm1578_vm1, %v1577_v41 }
 0x332   : > { %1186 = vmatmul.mubr.msk.bf16.vlgmr.msra.gmra.mrb[12].mxu0 %vm434_vm2, %v793_v58 }
 0x3f5   : > { %v475_v59 = vpop.f32.mrb[0].mxu1  ;;  %v593_v60 = vpop.f32.mrb[4].mxu0 }
 0x3f6   : > { %v1151_v61 = vpop.f32.mrb[1].mxu1  ;;  %v1163_v62 = vpop.f32.mrb[5].mxu0  ;;  %v482_v63 = vsel %vm434_vm2, %v475_v59, -inf  ;;  %v600_v5 = vsel %vm434_vm2, %v593_v60, -inf }
 0x3f7   : > { %483 = vmax.xlane.f32.xlu1 %v482_v63  ;;  %v478_v0 = vpop.f32.mrb[2].mxu1  ;;  %v596_v1 = vpop.f32.mrb[6].mxu0 }
 0x3f8   : > { %v1152_v2 = vpop.f32.mrb[3].mxu1  ;;  %v1164_v3 = vpop.f32.mrb[7].mxu0  ;;  %v485_v4 = vsel %vm434_vm2, %v478_v0, -inf  ;;  %v603_v10 = vsel %vm434_vm2, %v596_v1, -inf }
 0x3f9   : > { %486 = vmax.xlane.f32.xlu0 %v485_v4 }
 0x3fd   : > { %601 = vmax.xlane.f32.xlu0 %v600_v5  ;;  %v1885_v6 = vpop.f32.mrb[8].mxu0 }
 0x3fe   : > { %v1175_v7 = vpop.f32.mrb[9].mxu0  ;;  %v722_v17 = vsel %vm434_vm2, %v1885_v6, -inf }
 0x3ff   : > { %v718_v8 = vpop.f32.mrb[10].mxu0 }
 0x400   : > { %v1176_v9 = vpop.f32.mrb[11].mxu0  ;;  %v725_v11 = vsel %vm434_vm2, %v718_v8, -inf }
 0x401   : > { %604 = vmax.xlane.f32.xlu0 %v603_v10 }
 0x405   : > { %726 = vmax.xlane.f32.xlu0 %v725_v11  ;;  %v1889_v12 = vpop.f32.mrb[12].mxu0 }
 0x406   : > { %v1187_v13 = vpop.f32.mrb[13].mxu0  ;;  %v843_v18 = vsel %vm434_vm2, %v1889_v12, -inf }
 0x407   : > { %v839_v14 = vpop.f32.mrb[14].mxu0 }
 0x408   : > { %v1188_v15 = vpop.f32.mrb[15].mxu0  ;;  %620 = vrot.lane.b32.xlu1 %v1854_v47, %s1581_s27  ;;  %v846_v16 = vsel %vm434_vm2, %v839_v14, -inf }
 0x409   : > { %847 = vmax.xlane.f32.xlu0 %v846_v16 }
 0x41f   : > { %741 = vrot.lane.b32.xlu0 %v1854_v47, %s1582_s29 }
 0x42c   : > { %723 = vmax.xlane.f32.xlu1 %v722_v17 }
 0x430   : > { %844 = vmax.xlane.f32.xlu1 %v843_v18 }
 0x441   : > { %862 = vrot.lane.b32.xlu1 %v1854_v47, %s1584_s24 }
 0x484   : > { %v484_v19 = vpop.xlane.xlu1 %483 }
 0x485   : > { %v488_v20 = vsub.f32 %v475_v59, %v484_v19 }
 0x486   : > { %v487_v21 = vpop.xlane.xlu0 %486 }
 0x487   : > { %v490_v22 = vmul.f32 1.442695, %v488_v20  ;;  %v489_v23 = vsub.f32 %v478_v0, %v487_v21 }
 0x488   : > { %v621_v39 = vpop.permute.xlu1 %620 }
 0x489   : > { %v492_v24 = vmul.f32 1.442695, %v489_v23  ;;  %1332 = vpow2.f32 %v490_v22 }
 0x48a   : > { %v602_v25 = vpop.xlane.xlu0 %601 }
 0x48b   : > { %1334 = vpow2.f32 %v492_v24  ;;  %v606_v26 = vsub.f32 %v593_v60, %v602_v25 }
 0x48d   : > { %v608_v27 = vmul.f32 1.442695, %v606_v26 }
 0x48e   : > { %v605_v28 = vpop.xlane.xlu0 %604 }
 0x48f   : > { %1336 = vpow2.f32 %v608_v27  ;;  %v607_v29 = vsub.f32 %v596_v1, %v605_v28 }
 0x491   : > { %v610_v30 = vmul.f32 1.442695, %v607_v29 }
 0x492   : > { %v727_v31 = vpop.xlane.xlu0 %726 }
 0x493   : > { %1338 = vpow2.f32 %v610_v30  ;;  %v729_v32 = vsub.f32 %v718_v8, %v727_v31  ;;  %v1333_v33 = vpop.eup %1332 }
 0x494   : > { %v494_v2 = vsel %vm434_vm2, %v1333_v33, 0.0 }
 0x495   : > { %v1335_v34 = vpop.eup %1334  ;;  %v732_v35 = vmul.f32 1.442695, %v729_v32 }
 0x496   : > { %v848_v36 = vpop.xlane.xlu0 %847  ;;  %v500_v37 = vpack.c.bf16 %v1335_v34, %v1333_v33  ;;  %v497_v52 = vsel %vm434_vm2, %v1335_v34, 0.0 }
 0x497   : > { %1340 = vpow2.f32 %v732_v35  ;;  %v850_v38 = vsub.f32 %v839_v14, %v848_v36 }
 0x498   : > { %1156 = vmatmul.mubr.msk.bf16.vlgmr.msra.gmra.mrb[4].mxu1 %vm434_vm2, %v500_v37 }
 0x499   : > { %v1337_v40 = vpop.eup %1336  ;;  %v853_v42 = vmul.f32 1.442695, %v850_v38  ;;  %1166 = vmatpush3.bf16.msra.mxu1 %v621_v39  ;;  %1167 = vmatprep.mubr.msk.bf16.mxu1 %vm1578_vm1, %v1577_v41 }
 0x49a   : > { %v612_v43 = vsel %vm434_vm2, %v1337_v40, 0.0  ;;  %1177 = vmatprep.subr.bf16.mxu1 %v1577_v41  ;;  %v742_v47 = vpop.permute.xlu0 %741 }
 0x49b   : > { %1342 = vpow2.f32 %v853_v42  ;;  %613 = vadd.xlane.f32.xlu1 %v612_v43 }
 0x49d   : > { %v1339_v44 = vpop.eup %1338 }
 0x49e   : > { %v615_v45 = vsel %vm434_vm2, %v1339_v44, 0.0  ;;  %v618_v46 = vpack.c.bf16 %v1339_v44, %v1337_v40 }
 0x49f   : > { %616 = vadd.xlane.f32.xlu0 %v615_v45 }
 0x4a0   : > { %1168 = vmatmul.mubr.msk.bf16.vlgmr.msra.gmra.mrb[8].mxu1 %vm434_vm2, %v618_v46 }
 0x4a1   : > { %v1341_v48 = vpop.eup %1340  ;;  %1178 = vmatpush3.bf16.msra.mxu1 %v742_v47  ;;  %1179 = vmatprep.mubr.msk.bf16.mxu1 %vm1578_vm1, %v1577_v41 }
 0x4a2   : > { %v737_v49 = vsel %vm434_vm2, %v1341_v48, 0.0  ;;  %1189 = vmatprep.subr.bf16.mxu1 %v1577_v41 }
 0x4a3   : > { %738 = vadd.xlane.f32.xlu1 %v737_v49 }
 0x4a5   : > { %v1343_v50 = vpop.eup %1342 }
 0x4a6   : > { %v858_v51 = vsel %vm434_vm2, %v1343_v50, 0.0 }
 0x4a7   : > { %859 = vadd.xlane.f32.xlu1 %v858_v51 }
 0x4ab   : > { %498 = vadd.xlane.f32.xlu1 %v497_v52 }
 0x4b9   : > { %v724_v53 = vpop.xlane.xlu1 %723 }
 0x4ba   : > { %v728_v54 = vsub.f32 %v1885_v6, %v724_v53 }
 0x4bc   : > { %v730_v55 = vmul.f32 1.442695, %v728_v54 }
 0x4bd   : > { %v845_v56 = vpop.xlane.xlu1 %844 }
 0x4be   : > { %1344 = vpow2.f32 %v730_v55  ;;  %v849_v57 = vsub.f32 %v1889_v12, %v845_v56 }
 0x4c0   : > { %v851_v58 = vmul.f32 1.442695, %v849_v57 }
 0x4c1   : > { %v863_v62 = vpop.permute.xlu1 %862 }
 0x4c2   : > { %1346 = vpow2.f32 %v851_v58 }
 0x4c8   : > { %v1345_v59 = vpop.eup %1344 }
 0x4c9   : > { %v734_v60 = vsel %vm434_vm2, %v1345_v59, 0.0  ;;  %v740_v61 = vpack.c.bf16 %v1341_v48, %v1345_v59 }
 0x4ca   : > { %735 = vadd.xlane.f32.xlu0 %v734_v60 }
 0x4cb   : > { %1180 = vmatmul.mubr.msk.bf16.vlgmr.msra.gmra.mrb[12].mxu1 %vm434_vm2, %v740_v61 }
 0x4cc   : > { %v1347_v63 = vpop.eup %1346  ;;  %1190 = vmatpush3.bf16.msra.mxu1 %v863_v62  ;;  %1191 = vmatprep.mubr.msk.bf16.mxu1 %vm1578_vm1, %v1577_v41 }
 0x4cd   : > { %v855_v0 = vsel %vm434_vm2, %v1347_v63, 0.0  ;;  %v861_v1 = vpack.c.bf16 %v1343_v50, %v1347_v63 }
 0x4ce   : > { %856 = vadd.xlane.f32.xlu0 %v855_v0 }
 0x4d2   : > { %495 = vadd.xlane.f32.xlu0 %v494_v2 }
 0x4d3   : > { %1192 = vmatmul.mubr.msk.bf16.vlgmr.msra.gmra.mrb[16].mxu1 %vm434_vm2, %v861_v1 }
 0x528   : > { %v614_v3 = vpop.xlane.xlu1 %613 }
 0x529   : > { %1348 = vrcp.f32 %v614_v3 }
 0x52c   : > { %v617_v4 = vpop.xlane.xlu0 %616 }
 0x52d   : > { %1350 = vrcp.f32 %v617_v4 }
 0x530   : > { %v739_v17 = vpop.xlane.xlu1 %738 }
 0x531   : > { %1352 = vrcp.f32 %v739_v17 }
 0x533   : > { %v1349_v10 = vpop.eup %1348 }
 0x534   : > { %v860_v19 = vpop.xlane.xlu1 %859 }
 0x537   : > { %v1351_v11 = vpop.eup %1350 }
 0x538   : > { %v499_v40 = vpop.xlane.xlu1 %498 }
 0x53b   : > { %v1353_v22 = vpop.eup %1352 }
 0x557   : > { %v736_v18 = vpop.xlane.xlu0 %735 }
 0x558   : > { %1354 = vrcp.f32 %v736_v18 }
 0x559   : > { %1356 = vrcp.f32 %v860_v19 }
 0x55b   : > { %v857_v20 = vpop.xlane.xlu0 %856 }
 0x55c   : > { %1358 = vrcp.f32 %v857_v20 }
 0x55f   : > { %v496_v39 = vpop.xlane.xlu0 %495 }
 0x560   : > { %1360 = vrcp.f32 %v496_v39 }
 0x561   : > { %1362 = vrcp.f32 %v499_v40 }
 0x562   : > { %v1355_v24 = vpop.eup %1354 }
 0x563   : > { %v1357_v31 = vpop.eup %1356 }
 0x566   : > { %v1359_v33 = vpop.eup %1358 }
 0x56a   : > { %v1361_v44 = vpop.eup %1360 }
 0x56b   : > { %v538_v5 = vpop.f32.mrb[4].mxu1  ;;  %v1363_v47 = vpop.eup %1362 }
 0x56c   : > { %v1157_v6 = vpop.f32.mrb[5].mxu1  ;;  %v547_v50 = vmul.f32 %v1361_v44, %v538_v5 }
 0x56d   : > { %v541_v7 = vpop.f32.mrb[6].mxu1 }
 0x56e   : > { %v1158_v8 = vpop.f32.mrb[7].mxu1  ;;  %v548_v51 = vmul.f32 %v1363_v47, %v541_v7 }
 0x573   : > { %v660_v9 = vpop.f32.mrb[8].mxu1 }
 0x574   : > { %v1169_v41 = vpop.f32.mrb[9].mxu1  ;;  %v669_v13 = vmul.f32 %v1349_v10, %v660_v9 }
 0x575   : > { %v663_v12 = vpop.f32.mrb[10].mxu1 }
 0x576   : > { %v670_v14 = vmul.f32 %v1351_v11, %v663_v12  ;;  %v1170_v15 = vpop.f32.mrb[11].mxu1 }
 0x578   : > { %v1301_v16 = vpack.i.bf16 %v670_v14, %v669_v13 }
 0x57a   : > { %1302 = vrot.lane.b32.xlu0 %v1301_v16, %s1585_s30 }
 0x59e   : > { %v781_v21 = vpop.f32.mrb[12].mxu1 }
 0x59f   : > { %v1181_v23 = vpop.f32.mrb[13].mxu1  ;;  %v790_v26 = vmul.f32 %v1355_v24, %v781_v21 }
 0x5a0   : > { %v784_v25 = vpop.f32.mrb[14].mxu1 }
 0x5a1   : > { %v791_v27 = vmul.f32 %v1353_v22, %v784_v25  ;;  %v1182_v28 = vpop.f32.mrb[15].mxu1 }
 0x5a3   : > { %v1306_v29 = vpack.i.bf16 %v791_v27, %v790_v26 }
 0x5a5   : > { %1307 = vrot.lane.b32.xlu1 %v1306_v29, %s1583_s14 }
 0x5a6   : > { %v902_v30 = vpop.f32.mrb[16].mxu1 }
 0x5a7   : > { %v1193_v32 = vpop.f32.mrb[17].mxu1  ;;  %v911_v35 = vmul.f32 %v1359_v33, %v902_v30 }
 0x5a8   : > { %v905_v34 = vpop.f32.mrb[18].mxu1 }
 0x5a9   : > { %v912_v36 = vmul.f32 %v1357_v31, %v905_v34  ;;  %v1194_v37 = vpop.f32.mrb[19].mxu1 }
 0x5ab   : > { %v1311_v38 = vpack.i.bf16 %v912_v36, %v911_v35 }
 0x5ad   : > { %1312 = vrot.lane.b32.xlu1 %v1311_v38, %s1579_s23  ;;  %s1586_s23 = smov [#allocation11]  }
 0x5ae   : > { %s1482_s27 = sshll.u32 %s1586_s23, 4  ;;  %s1483_s27 = int_to_ptr.vmem [resolvable:$false] %s1482_s27 }
 0x5af   : > { %s1484_s29 = scalar_lea.vmem %s1483_s27, 256  ;;  %p1485_p6 = scmp.lt.s32.totalorder %s1936_s13, %s1483_s27 }
 0x5b0   : > { %p1486_p8 = scmp.lt.s32.totalorder %s1484_s29, %s1478_s6 }
 0x5b2   : > { %p1487_p0 = por %p1486_p8, %p1485_p6 }
 0x5b4   : > { %p1488_p5 = pnand %p1487_p0, %p1481_p4 }
 0x5ec   : > { %v1303_v42 = vpop.permute.xlu0 %1302 }
 0x5ed   : > { %v1305_v45 = vunpack.i.h.bf16 %v1303_v42  ;;  %v1304_v46 = vunpack.i.l.bf16 %v1303_v42 }
 0x5ef   : > { %v938_v53 = vsel %vm434_vm2, %v548_v51, %v1305_v45  ;;  %v937_v54 = vsel %vm434_vm2, %v547_v50, %v1304_v46 }
 0x617   : > { %v1308_v43 = vpop.permute.xlu1 %1307 }
 0x618   : > { %v1310_v48 = vunpack.i.h.bf16 %v1308_v43  ;;  %v1309_v49 = vunpack.i.l.bf16 %v1308_v43 }
 0x61a   : > { %v941_v57 = vsel %vm939_vm3, %v938_v53, %v1310_v48  ;;  %v940_v58 = vsel %vm939_vm3, %v937_v54, %v1309_v49 }
 0x61f   : > { %v1313_v52 = vpop.permute.xlu1 %1312 }
 0x620   : > { %v1315_v55 = vunpack.i.h.bf16 %v1313_v52  ;;  %v1314_v56 = vunpack.i.l.bf16 %v1313_v52 }
 0x622   : > { %v944_v59 = vsel %vm942_vm4, %v941_v57, %v1315_v55  ;;  %v943_v60 = vsel %vm942_vm4, %v940_v58, %v1314_v56 }
 0x623   : > { %v1129_v61 = vpack.c.bf16 %v944_v59, %v944_v59  ;;  %v1128_v62 = vpack.c.bf16 %v943_v60, %v943_v60 }
 0x625   : > { %955 = vst.msk [vmem:[%s277_s8 + $0x4] sm:$0xf] %vm953_vm5, %v1129_v61  ;;  %954 = vst.msk [vmem:[%s277_s8] sm:$0xf] %vm953_vm5, %v1128_v62 }
 0x626   : > { %1491 = shalt.err (!%p1488_p5)
}
 0x627   : > { %s1492_s14 = scalar_lea.hbm %s1934_s5, 128  ;;  %s1496_s7 = scalar_lea.hbm %s1991_s4, 256 }
 0x628   : > { %p1493_p10 = scmp.ne.s32.totalorder %s1934_s5, %s1492_s14  ;;  %p1497_p3 = scmp.lt.u32.totalorder %s1934_s5, %s1991_s4 }
 0x629   : > { %p1498_p7 = scmp.lt.u32.totalorder %s1496_s7, %s1492_s14  ;;  %p1500_p11 = scmp.lt.u32.totalorder %s1492_s14, %s1934_s5 }
 0x62a   : > { %p1494_p13 = pnand %p1493_p10, %p1765_p2 }
 0x62b   : > { %p1499_p12 = por %p1498_p7, %p1497_p3 }
 0x62c   : > { %p1495_p9 = pneg %p1494_p13 }
 0x62d   : > { %p1501_p1 = por %p1500_p11, %p1499_p12 }
 0x62f   : > { %p1502_p4 = pnand %p1501_p1, %p1495_p9 }
 0x631   : > { %1505 = shalt.err (!%p1502_p4)
}
 0x632   : > { %s1587_s28 = smov 4  }
 0x633   : > { %1209 = dma.vmem_to_hbm [thread:$0]  (%p1765_p2), %s1936_s13, 128, %s1934_s5, %s957_s18, %s1580_s25, %s1580_s25, %s1587_s28  }
 0x634 PF: > { %s986_s22 = sand.u32 1, %s1548_s15   ;;  %p2009_p6 = scmp.ne.s32.totalorder %s1999_s26, 0 }
 0x635   : > { %p2010_p8 = scmp.ge.s32.totalorder %s1568_s20, 2  ;;  %s987_s6 = scalar_lea.sflag [#allocation5], %s986_s22 }
 0x637   : > { %p1226_p0 = pnand %p2010_p8, %p2009_p6 }
 0x639   : > { %1543 = dma.done.wait (!%p1226_p0), %s987_s6, 128  }
 0x63a   : > { %1545 = vsyncadd (!%p1226_p0), %s987_s6, 4294967168  ;;  %s22_s20 = sadd.s32 1, %s1568_s20   ;;  %s2011_s15 = smov %s1552_s16 }
 0x63b   : > { %p19_p5 = scmp.ge.s32.totalorder %s22_s20, 4   ;;  %s2012_s16 = smov %s1556_s17 }
 0x63c   : > { %s2013_s17 = smov %s1777_s21  ;;  %s2014_s18 = smov %s1564_s19 }
 0x63d   : > { %s2015_s19 = smov %s2017_s10  ;;  %21 = sbr.rel (!%p19_p5) target bundleno = 8 (0x8), region = 98 }
 0x644   :  { %992 = vsyncpa [#allocation4], 1 }
 0x645   :  { %994 = vsyncpa [#allocation4 + $0x1], 1 }
 0x646   :  { %995 = vsyncpa [#allocation7], 1 }
 0x647   :  { %996 = vsyncpa [#allocation10], 1 }
 0x648   :  { %997 = vsyncpa [#allocation5], 1 }
 0x649   :  { %999 = vsyncpa [#allocation5 + $0x1], 1 }

</bundles_post_ra>
